<compile_context>
chip_gen: v7x
topology: tpu7x:2x2x1
jax: 0.10.0
libtpu: 0.0.40
codegen_flags: <defaults>
</compile_context>

<pallas_src>
import jax
import jax.numpy as jnp
from jax.experimental import pallas as pl
from jax.experimental.pallas import tpu as pltpu


def _pick_pack(H, W):
    """Image rows packed side-by-side along the lane axis (must divide H)."""
    divs = [k for k in range(1, H + 1) if H % k == 0]
    for k in divs:                       # best: packed row width is a whole number of vregs
        if (k * W) % 128 == 0:
            return k
    for k in divs:                       # next best: at least one full vreg per packed row
        if k * W >= 128:
            return k
    return H                             # tiny plane: the whole plane in one lane row


def _pick_block_planes(P, Rp, plane_bytes, sublane_mult, target_bytes):
    """Planes per block.  Hard constraint: tb*Rp % sublane_mult == 0 (BlockSpec
    second-minor rule) unless the block is the whole array.  Soft goals:
    ~target_bytes per block, >= 2 grid steps (both v7x cores), balanced blocks."""
    max_tb = int(max(1, min(P, target_bytes // plane_bytes)))
    if P >= 2:
        max_tb = max(1, min(max_tb, P // 2))   # guarantee at least 2 grid steps
    g = -(-P // max_tb)                        # number of grid steps
    tb0 = -(-P // g)                           # balanced block size (minimal tail waste)
    for tb in range(tb0, max_tb + 1):          # smallest aligned block >= balanced size
        if (tb * Rp) % sublane_mult == 0:
            return tb
    for tb in range(tb0 - 1, 0, -1):           # else largest aligned block below it
        if (tb * Rp) % sublane_mult == 0:
            return tb
    # TODO(synk): no sublane-aligned plane split exists (odd Rp, small P); fall back
    # to one whole-array block (legal: block == full dims).  Fine for small inputs.
    return P


def _make_sobel_kernel(W, Wp, Rp):
    """Sobel magnitude over a lane-packed block of whole (H, W) planes.

    Block shape is (tb*Rp, Wp): every lane row holds K = Wp // W consecutive
    image rows of one channel plane side by side; every Rp consecutive sublane
    rows form one whole plane, and blocks always contain whole planes.
    """
    K = Wp // W

    def kernel(x_ref, o_ref):
        x = x_ref[...].astype(jnp.float32)
        BH = x.shape[0]

        def lane_roll(v, s):                 # v[r, (c - s) mod Wp]
            s %= Wp
            return v if s == 0 else pltpu.roll(v, s, axis=1)

        def sub_roll(v, s):                  # v[(r - s) mod BH, c]
            s %= BH
            return v if s == 0 else pltpu.roll(v, s, axis=0)

        def mod(v, m, extent):               # cheap v % m for a non-negative iota
            if m >= extent:
                return v                     # values already < m
            if m & (m - 1) == 0:
                return v & (m - 1)           # power of two -> single AND
            return v % m

        col = jax.lax.broadcasted_iota(jnp.int32, x.shape, 1)

        # --- vertical neighbors (image row +-1), zero padded at plane top/bottom ---
        if Rp == 1:
            # whole plane lives in one lane row: row masks not needed
            x_up = jnp.where(col >= W, lane_roll(x, W), 0.0)
            x_dn = jnp.where(col < Wp - W, lane_roll(x, -W), 0.0)
        else:
            row = jax.lax.broadcasted_iota(jnp.int32, x.shape, 0)
            rin = mod(row, Rp, BH)           # row index within the plane (computed once)
            top = rin == 0
            bot = rin == Rp - 1
            if K == 1:
                # Wp == W: vertical neighbor is purely a sublane shift
                x_up = jnp.where(top, 0.0, sub_roll(x, 1))
                x_dn = jnp.where(bot, 0.0, sub_roll(x, -1))
            else:
                a = lane_roll(x, W)          # up neighbor lives W lanes back ...
                x_up = jnp.where(col >= W, a, jnp.where(top, 0.0, sub_roll(a, 1)))
                b = lane_roll(x, -W)         # ... down neighbor W lanes ahead
                x_dn = jnp.where(col < Wp - W, b, jnp.where(bot, 0.0, sub_roll(b, -1)))

        # Separable Sobel: vertical pass, then horizontal pass.
        t1 = x_up + 2.0 * x + x_dn           # vertical [1, 2, 1]   (for gx)
        t2 = x_up - x_dn                     # vertical [1, 0, -1]  (for gy)

        cin = mod(col, W, Wp)                # column within the image row (computed once)
        left = cin == 0
        right = cin == W - 1

        def shift_left(v):                   # v[r, c-1], zero at image left edge
            return jnp.where(left, 0.0, lane_roll(v, 1))

        def shift_right(v):                  # v[r, c+1], zero at image right edge
            return jnp.where(right, 0.0, lane_roll(v, -1))

        gx = shift_left(t1) - shift_right(t1)               # horizontal [1, 0, -1]
        gy = shift_left(t2) + 2.0 * t2 + shift_right(t2)    # horizontal [1, 2, 1]

        o_ref[...] = jnp.sqrt(gx * gx + gy * gy).astype(o_ref.dtype)

    return kernel


def channelwise_sobel_magnitude(x, *, target_block_bytes=4 << 20):
    """x: (N, C, H, W) -> (N, C, H, W) Sobel gradient magnitude per channel."""
    N, C, H, W = x.shape
    P = N * C

    K = _pick_pack(H, W)      # image rows packed per lane row (divides H)
    Rp = H // K               # packed (sublane) rows per plane
    Wp = K * W                # lane width of the packed layout

    # Pure row-major reshape: no transpose, no data movement.
    x2 = x.reshape(P * Rp, Wp)

    itemsize = jnp.dtype(x.dtype).itemsize
    sublane_mult = 8 * max(1, 4 // itemsize)      # 8 f32 / 16 bf16 / 32 int8

    try:
        vmem_cap = pltpu.get_tpu_info().vmem_capacity_bytes
    except Exception:
        vmem_cap = 64 * 1024 * 1024               # conservative fallback
    vmem_limit = int(min(vmem_cap // 2, 64 * 1024 * 1024))   # 64 MiB v5e/v6e, 32 MiB v7x

    # The body keeps ~10 block-sized f32 temporaries in VMEM on top of the
    # double-buffered in/out blocks, so budget the block well below the limit.
    plane_f32_bytes = Rp * Wp * 4
    blk_target = min(target_block_bytes, vmem_limit // 16)
    tb = _pick_block_planes(P, Rp, plane_f32_bytes, sublane_mult, blk_target)
    block_rows = tb * Rp
    num_blocks = -(-P // tb)   # last block may be partial; its padding never leaks
                               # into valid outputs (plane-boundary masks) and OOB
                               # writes are dropped by Pallas.

    # If a single plane already exceeds the budget, raise the limit instead of failing.
    est_need = 16 * block_rows * Wp * 4
    vmem_limit = int(min(max(vmem_limit, est_need), vmem_cap - (8 << 20)))
    # TODO(synk): planes so large that one plane alone overflows VMEM would need an
    # intra-plane (halo) split along the row axis; not implemented here.

    out2 = pl.pallas_call(
        _make_sobel_kernel(W, Wp, Rp),
        out_shape=jax.ShapeDtypeStruct((P * Rp, Wp), x.dtype),
        grid_spec=pltpu.PrefetchScalarGridSpec(
            num_scalar_prefetch=0,
            grid=(num_blocks,),
            in_specs=[pl.BlockSpec((block_rows, Wp), lambda i: (i, 0))],
            out_specs=pl.BlockSpec((block_rows, Wp), lambda i: (i, 0)),
        ),
        compiler_params=pltpu.CompilerParams(
            dimension_semantics=("parallel",),
            vmem_limit_bytes=vmem_limit,
        ),
    )(x2)

    return out2.reshape(N, C, H, W)


def _reference(x):
    """Exact pure-JAX reference: zero-padded 3x3 cross-correlation + magnitude."""
    N, C, H, W = x.shape
    xp = jnp.pad(x.astype(jnp.float32), ((0, 0), (0, 0), (1, 1), (1, 1)))

    def sh(di, dj):
        return xp[:, :, 1 + di:1 + di + H, 1 + dj:1 + dj + W]

    gx = (sh(-1, -1) - sh(-1, 1) + 2.0 * (sh(0, -1) - sh(0, 1))
          + sh(1, -1) - sh(1, 1))
    gy = (sh(-1, -1) + 2.0 * sh(-1, 0) + sh(-1, 1)
          - sh(1, -1) - 2.0 * sh(1, 0) - sh(1, 1))
    return jnp.sqrt(gx * gx + gy * gy).astype(x.dtype)


if __name__ == "__main__":
    key = jax.random.PRNGKey(0)
    N, C, H, W = 2, 4, 16, 16
    x = jax.random.normal(key, (N, C, H, W), dtype=jnp.float32)

    out = jax.block_until_ready(channelwise_sobel_magnitude(x))

    ref = _reference(x)
    assert out.shape == (N, C, H, W)
    assert jnp.allclose(out, ref, atol=1e-4, rtol=1e-4), (
        float(jnp.max(jnp.abs(out - ref))))

    print("KERNEL_OK")
</pallas_src>

<mosaic_0001>
module attributes {stable_mosaic.version = 11 : i64} {
  func.func @kernel(%arg0: i32, %arg1: memref<8x128xf32, #tpu.memory_space<vmem>>, %arg2: memref<8x128xf32, #tpu.memory_space<vmem>>) attributes {dimension_semantics = [#tpu.dimension_semantics<parallel>], iteration_bounds = array<i64: 2>, scalar_prefetch = 0 : i64, scratch_operands = 0 : i64, tpu.core_type = #tpu.core_type<tc>, window_params = [{transform_indices = @transform_0, window_bounds = array<i64: 8, 128>}, {transform_indices = @transform_1, window_bounds = array<i64: 8, 128>}]} {
    %c0 = arith.constant 0 : index
    %c0_0 = arith.constant 0 : index
    %0 = vector.load %arg1[%c0, %c0_0] : memref<8x128xf32, #tpu.memory_space<vmem>>, vector<8x128xf32>
    %1 = tpu.iota {dimensions = array<i32: 1>} : vector<8x128xi32>
    %2 = tpu.iota {dimensions = array<i32: 0>} : vector<8x128xi32>
    %c1_i32 = arith.constant 1 : i32
    %3 = vector.broadcast %c1_i32 : i32 to vector<8x128xi32>
    %4 = arith.andi %2, %3 : vector<8x128xi32>
    %c0_i32 = arith.constant 0 : i32
    %5 = vector.broadcast %c0_i32 : i32 to vector<8x128xi32>
    %6 = arith.cmpi eq, %4, %5 : vector<8x128xi32>
    %c1_i32_1 = arith.constant 1 : i32
    %7 = vector.broadcast %c1_i32_1 : i32 to vector<8x128xi32>
    %8 = arith.cmpi eq, %4, %7 : vector<8x128xi32>
    %c16_i32 = arith.constant 16 : i32
    %9 = tpu.dynamic_rotate %0 by %c16_i32 dim 1 : vector<8x128xf32>, i32 -> vector<8x128xf32>
    %c16_i32_2 = arith.constant 16 : i32
    %10 = vector.broadcast %c16_i32_2 : i32 to vector<8x128xi32>
    %11 = arith.cmpi sge, %1, %10 : vector<8x128xi32>
    %c1_i32_3 = arith.constant 1 : i32
    %12 = tpu.dynamic_rotate %9 by %c1_i32_3 dim 0 : vector<8x128xf32>, i32 -> vector<8x128xf32>
    %cst = arith.constant 0.000000e+00 : f32
    %13 = vector.broadcast %cst : f32 to vector<8x128xf32>
    %14 = arith.select %6, %13, %12 : vector<8x128xi1>, vector<8x128xf32>
    %15 = arith.select %11, %9, %14 : vector<8x128xi1>, vector<8x128xf32>
    %c112_i32 = arith.constant 112 : i32
    %16 = tpu.dynamic_rotate %0 by %c112_i32 dim 1 : vector<8x128xf32>, i32 -> vector<8x128xf32>
    %c112_i32_4 = arith.constant 112 : i32
    %17 = vector.broadcast %c112_i32_4 : i32 to vector<8x128xi32>
    %18 = arith.cmpi slt, %1, %17 : vector<8x128xi32>
    %c7_i32 = arith.constant 7 : i32
    %19 = tpu.dynamic_rotate %16 by %c7_i32 dim 0 : vector<8x128xf32>, i32 -> vector<8x128xf32>
    %cst_5 = arith.constant 0.000000e+00 : f32
    %20 = vector.broadcast %cst_5 : f32 to vector<8x128xf32>
    %21 = arith.select %8, %20, %19 : vector<8x128xi1>, vector<8x128xf32>
    %22 = arith.select %18, %16, %21 : vector<8x128xi1>, vector<8x128xf32>
    %cst_6 = arith.constant 2.000000e+00 : f32
    %23 = vector.broadcast %cst_6 : f32 to vector<8x128xf32>
    %24 = arith.mulf %23, %0 : vector<8x128xf32>
    %25 = arith.addf %15, %24 : vector<8x128xf32>
    %26 = arith.addf %25, %22 : vector<8x128xf32>
    %27 = arith.subf %15, %22 : vector<8x128xf32>
    %c15_i32 = arith.constant 15 : i32
    %28 = vector.broadcast %c15_i32 : i32 to vector<8x128xi32>
    %29 = arith.andi %1, %28 : vector<8x128xi32>
    %c0_i32_7 = arith.constant 0 : i32
    %30 = vector.broadcast %c0_i32_7 : i32 to vector<8x128xi32>
    %31 = arith.cmpi eq, %29, %30 : vector<8x128xi32>
    %c15_i32_8 = arith.constant 15 : i32
    %32 = vector.broadcast %c15_i32_8 : i32 to vector<8x128xi32>
    %33 = arith.cmpi eq, %29, %32 : vector<8x128xi32>
    %c1_i32_9 = arith.constant 1 : i32
    %34 = tpu.dynamic_rotate %26 by %c1_i32_9 dim 1 : vector<8x128xf32>, i32 -> vector<8x128xf32>
    %cst_10 = arith.constant 0.000000e+00 : f32
    %35 = vector.broadcast %cst_10 : f32 to vector<8x128xf32>
    %36 = arith.select %31, %35, %34 : vector<8x128xi1>, vector<8x128xf32>
    %c127_i32 = arith.constant 127 : i32
    %37 = tpu.dynamic_rotate %26 by %c127_i32 dim 1 : vector<8x128xf32>, i32 -> vector<8x128xf32>
    %cst_11 = arith.constant 0.000000e+00 : f32
    %38 = vector.broadcast %cst_11 : f32 to vector<8x128xf32>
    %39 = arith.select %33, %38, %37 : vector<8x128xi1>, vector<8x128xf32>
    %40 = arith.subf %36, %39 : vector<8x128xf32>
    %c1_i32_12 = arith.constant 1 : i32
    %41 = tpu.dynamic_rotate %27 by %c1_i32_12 dim 1 : vector<8x128xf32>, i32 -> vector<8x128xf32>
    %cst_13 = arith.constant 0.000000e+00 : f32
    %42 = vector.broadcast %cst_13 : f32 to vector<8x128xf32>
    %43 = arith.select %31, %42, %41 : vector<8x128xi1>, vector<8x128xf32>
    %cst_14 = arith.constant 2.000000e+00 : f32
    %44 = vector.broadcast %cst_14 : f32 to vector<8x128xf32>
    %45 = arith.mulf %44, %27 : vector<8x128xf32>
    %46 = arith.addf %43, %45 : vector<8x128xf32>
    %c127_i32_15 = arith.constant 127 : i32
    %47 = tpu.dynamic_rotate %27 by %c127_i32_15 dim 1 : vector<8x128xf32>, i32 -> vector<8x128xf32>
    %cst_16 = arith.constant 0.000000e+00 : f32
    %48 = vector.broadcast %cst_16 : f32 to vector<8x128xf32>
    %49 = arith.select %33, %48, %47 : vector<8x128xi1>, vector<8x128xf32>
    %50 = arith.addf %46, %49 : vector<8x128xf32>
    %51 = arith.mulf %40, %40 : vector<8x128xf32>
    %52 = arith.mulf %50, %50 : vector<8x128xf32>
    %53 = arith.addf %51, %52 : vector<8x128xf32>
    %54 = math.sqrt %53 : vector<8x128xf32>
    %c0_17 = arith.constant 0 : index
    %c0_18 = arith.constant 0 : index
    %55 = vector.load %arg2[%c0_17, %c0_18] : memref<8x128xf32, #tpu.memory_space<vmem>>, vector<8x128xf32>
    tpu.vector_store %arg2[%c0_17, %c0_18], %54 {strides = array<i32>} : memref<8x128xf32, #tpu.memory_space<vmem>>, vector<8x128xf32>,
    return
  }
  func.func @transform_0(%arg0: i32) -> (i32, i32) {
    %c0_i32 = arith.constant 0 : i32
    %c0_i32_0 = arith.constant 0 : i32
    return %arg0, %c0_i32 : i32, i32
  }
  func.func @transform_1(%arg0: i32) -> (i32, i32) {
    %c0_i32 = arith.constant 0 : i32
    %c0_i32_0 = arith.constant 0 : i32
    return %arg0, %c0_i32 : i32, i32
  }
}

</mosaic_0001>

<bundles_post_ra>
// kernel: tpu_custom_call.1
= control target key start
LH: loop header
LB: loop body
LE: loop exit
PB: predicated region body
PF: predicated region fallthrough
CT: control target
= control target key end

     0   :  { %6 = vsyncpa [#allocation3], 0  ;;  %s613_s0 = inlined_call_operand.hbm [shape: f32[16,128], index: 0, kind: input, shape index: {}]   ;;  %s614_s1 = inlined_call_operand.hbm [shape: f32[16,128], index: 1, kind: output, shape index: {}]  }
   0x1   :  { %8 = vsyncpa [#allocation3 + $0x1], 0 }
   0x2   :  { %9 = vsyncpa [#allocation4], 0 }
   0x3   :  { %11 = vsyncpa [#allocation4 + $0x1], 0  ;;  %s448_s6 = smov 0   ;;  %s450_s7 = smov 0  }
   0x4   :  { %s452_s8 = smov 0   ;;  %s454_s9 = smov 0  }
   0x5 LB: > { %s469_s10 = sadd.s32 4294967295, %s430_s9   ;;  %s270_s11 = sadd.s32 4294967294, %s430_s9   ;;  %s430_s9 = sphi %s454_s9, %s629_s9   ;;  %s426_s8 = sphi %s452_s8, %s628_s8   ;;  %s422_s7 = sphi %s450_s7, %s627_s7   ;;  %s418_s6 = sphi %s448_s6, %s626_s6  }
   0x6   : > { %s473_s12 = sadd.s32 1, %s430_s9   ;;  %s24_s13 = sadd.s32 1, %s426_s8 }
   0x7   : > { %s21_s14 = ssub.s32 %s430_s9, %s473_s12  ;;  %p31_p0 = scmp.ne.s32.totalorder %s426_s8, %s422_s7 }
   0x8   : > { %p22_p1 = scmp.eq.s32.totalorder %s21_s14, 0  ;;  %p32_p2 = scmp.eq.s32.totalorder %s430_s9, 0 }
   0x9   : > { %p37_p3 = scmp.ne.s32.totalorder %s422_s7, %s418_s6  ;;  %p38_p4 = scmp.eq.s32.totalorder %s469_s10, 0 }
   0xa   : > { %s485_s15 = scalar_select %p22_p1, %s426_s8, %s24_s13  }
   0xb   : > { %p487_p5 = por %p32_p2, %p31_p0  ;;  %p491_p6 = por %p38_p4, %p37_p3 }
   0xc   : > { %p61_p7 = scmp.eq.s32.totalorder %s469_s10, 1  ;;  %p67_p8 = scmp.eq.s32.totalorder %s270_s11, 1 }
   0xd   : > { %p294_p10 = scmp.lt.s32.totalorder %s430_s9, 2  ;;  %s87_s20 = sand.u32 1, %s426_s8  }
   0xe   : > { %p498_p11 = por %p61_p7, %p31_p0  ;;  %p502_p12 = por %p67_p8, %p37_p3 }
   0xf   : > { %s274_s21 = sshll.u32 %s430_s9, 7  ;;  %s273_s22 = sshll.u32 %s87_s20, 3 }
  0x10   : > { %s618_s18 = scalar_select %p498_p11, 1, 0 }
  0x11   : > { %s619_s19 = scalar_select %p502_p12, 1, 0 }
  0x12   : > { %s511_s25 = scalar_lea.hbm %s613_s0, %s274_s21  ;;  %s91_s26 = scalar_lea.vmem [#allocation2], %s273_s22 }
  0x13   : > { %s98_s27 = sshll.u32 %s91_s26, 4  ;;  %p515_p13 = pnand %p294_p10, %p487_p5  ;;  %s519_s27 = int_to_ptr.vmem [resolvable:$true] %s98_s27 }
  0x14   : > { %s88_s29 = scalar_lea.sflag [#allocation3], %s87_s20  ;;  %s334_s30 = scalar_lea.hbm %s511_s25, 128 }
  0x15   : > { %p335_p2 = scmp.ne.s32.totalorder %s511_s25, %s334_s30  ;;  %p336_p3 = pneg %p515_p13 }
  0x16   : > { %s339_s4 = scalar_lea.hbm %s613_s0, 256  ;;  %p340_p5 = scmp.lt.u32.totalorder %s511_s25, %s613_s0 }
  0x17   : > { %p337_p4 = pnand %p336_p3, %p335_p2  ;;  %p341_p8 = scmp.lt.u32.totalorder %s339_s4, %s334_s30 }
  0x18   : > { %p343_p9 = scmp.lt.u32.totalorder %s334_s30, %s511_s25 }
  0x19   : > { %p338_p7 = pneg %p337_p4  ;;  %p342_p10 = por %p341_p8, %p340_p5 }
  0x1b   : > { %p344_p0 = por %p343_p9, %p342_p10 }
  0x1d   : > { %p345_p1 = pnand %p344_p0, %p338_p7 }
  0x1f   : > { %348 = shalt.err (!%p345_p1)
}
  0x20   : > { %s349_s13 = scalar_lea.vmem %s519_s27, 128  ;;  %s432_s14 = smov [#allocation2]  }
  0x21   : > { %p350_p2 = scmp.ne.s32.totalorder %s519_s27, %s349_s13  ;;  %s354_s16 = sshll.u32 %s432_s14, 4  ;;  %s355_s16 = int_to_ptr.vmem [resolvable:$false] %s354_s16 }
  0x22   : > { %s356_s20 = scalar_lea.vmem %s355_s16, 256  ;;  %p357_p11 = scmp.lt.s32.totalorder %s519_s27, %s355_s16 }
  0x23   : > { %p352_p4 = pnand %p350_p2, %p336_p3  ;;  %p358_p5 = scmp.lt.s32.totalorder %s356_s20, %s349_s13 }
  0x25   : > { %p353_p12 = pneg %p352_p4  ;;  %p359_p8 = por %p358_p5, %p357_p11 }
  0x27   : > { %p360_p9 = pnand %p359_p8, %p353_p12 }
  0x29   : > { %363 = shalt.err (!%p360_p9)
}
  0x2a   : > { %289 = dma.hbm_to_vmem [thread:$0]  (!%p515_p13), %s511_s25, 128, %s519_s27, %s88_s29  }
  0x2b   : > { %p621_p0 = scmp.lt.s32.totalorder %s430_s9, 3  ;;  %p622_p1 = scmp.ge.s32.totalorder %s430_s9, 1 }
  0x2d   : > { %p104_p3 = pnand %p622_p1, %p621_p0 }
  0x2e   : > { %s553_s21 = sand.u32 (!%p104_p3), 1, %s422_s7  }
  0x2f   : > { %107 = sbr.rel (%p104_p3) target bundleno = 340 (0x154), region = 24  ;;  %s276_s22 = sshll.u32 (!%p104_p3), %s553_s21, 3 }
  0x30   : > { %s110_s23 = scalar_lea.sflag (!%p104_p3), [#allocation3], %s553_s21  ;;  %s113_s24 = scalar_lea.vmem (!%p104_p3), [#allocation2], %s276_s22 }
  0x36   : > { %409 = dma.done.wait (%p491_p6), %s110_s23, 128  }
  0x37   : > { %411 = vsyncadd (%p491_p6), %s110_s23, 4294967168  ;;  %v132_v0 = vld [vmem:[%s113_s24] sm:$0xff]  ;;  %s433_s25 = smov 16   ;;  %s434_s26 = smov 112   ;;  %v133_v1 = vlaneseq }
  0x38   : > { %140 = vrot.lane.b32.xlu0 %v132_v0, %s433_s25  ;;  %v152_v7 = vmul.f32 2.0, %v132_v0  ;;  %s435_s17 = smov 1   ;;  %s436_s27 = smov 127  }
  0x39   : > { %v136_v2 = vshrl.u32 %v133_v1, 7  ;;  %v134_v4 = vand.u32 127, %v133_v1  ;;  %s279_s28 = sshll.u32 %s469_s10, 7  ;;  %s131_s29 = scalar_lea.vmem [#allocation5], %s276_s22 }
  0x3a   : > { %s200_s30 = sshll.u32 %s131_s29, 4  ;;  %s569_s4 = scalar_lea.hbm %s614_s1, %s279_s28  ;;  %s571_s30 = int_to_ptr.vmem [resolvable:$true] %s200_s30 }
  0x3b   : > { %v137_v3 = vand.u32 1, %v136_v2  ;;  %vm142_vm1 = vcmp.ge.s32.totalorder %v134_v4, 16  ;;  %vm148_vm3 = vcmp.lt.s32.totalorder %v134_v4, 112  ;;  %v156_v17 = vand.u32 15, %v134_v4  ;;  %s187_s10 = scalar_lea.sflag [#allocation4], %s553_s21  ;;  %s364_s5 = scalar_lea.vmem %s571_s30, 128 }
  0x3c   : > { %146 = vrot.lane.b32.xlu0 %v132_v0, %s434_s26  ;;  %p365_p6 = scmp.ne.s32.totalorder %s571_s30, %s364_s5  ;;  %p623_p11 = scmp.ne.s32.totalorder %s618_s18, 0 }
  0x3d   : > { %vm138_vm0 = vcmp.eq.s32.totalorder %v137_v3, 0  ;;  %vm139_vm2 = vcmp.eq.s32.totalorder %v137_v3, 1  ;;  %vm157_vm4 = vcmp.eq.s32.totalorder %v156_v17, 0  ;;  %vm158_vm5 = vcmp.eq.s32.totalorder %v156_v17, 15  ;;  %s437_s11 = smov [#allocation5]  }
  0x3e   : > { %p366_p12 = pnand %p365_p6, %p623_p11  ;;  %s368_s13 = sshll.u32 %s437_s11, 4  ;;  %s369_s13 = int_to_ptr.vmem [resolvable:$false] %s368_s13 }
  0x3f   : > { %s370_s14 = scalar_lea.vmem %s369_s13, 256  ;;  %p371_p7 = scmp.lt.s32.totalorder %s571_s30, %s369_s13 }
  0x40   : > { %p367_p13 = pneg %p366_p12  ;;  %p372_p10 = scmp.lt.s32.totalorder %s370_s14, %s364_s5 }
  0x42   : > { %p373_p2 = por %p372_p10, %p371_p7 }
  0x44   : > { %p374_p4 = pnand %p373_p2, %p367_p13 }
  0xaa   : > { %v141_v5 = vpop.permute.xlu0 %140 }
  0xab   : > { %v143_v6 = vrot.slane %v141_v5, 7 }
  0xad   : > { %v144_v8 = vsel %vm138_vm0, 0.0, %v143_v6 }
  0xae   : > { %v145_v9 = vsel %vm142_vm1, %v141_v5, %v144_v8  ;;  %v147_v10 = vpop.permute.xlu0 %146 }
  0xaf   : > { %v149_v11 = vrot.slane %v147_v10, 1  ;;  %v153_v12 = vadd.f32 %v152_v7, %v145_v9 }
  0xb1   : > { %v150_v13 = vsel %vm139_vm2, 0.0, %v149_v11 }
  0xb2   : > { %v151_v14 = vsel %vm148_vm3, %v147_v10, %v150_v13 }
  0xb3   : > { %v154_v15 = vadd.f32 %v153_v12, %v151_v14  ;;  %v155_v16 = vsub.f32 %v145_v9, %v151_v14 }
  0xb5   : > { %166 = vrot.lane.b32.xlu1 %v155_v16, %s435_s17  ;;  %162 = vrot.lane.b32.xlu0 %v154_v15, %s436_s27  ;;  %v169_v19 = vmul.f32 2.0, %v155_v16 }
  0xb9   : > { %159 = vrot.lane.b32.xlu1 %v154_v15, %s435_s17 }
  0xbd   : > { %171 = vrot.lane.b32.xlu1 %v155_v16, %s436_s27 }
 0x127   : > { %v167_v18 = vpop.permute.xlu1 %166  ;;  %v163_v22 = vpop.permute.xlu0 %162 }
 0x128   : > { %v168_v20 = vsel %vm157_vm4, 0.0, %v167_v18  ;;  %v164_v25 = vsel %vm158_vm5, 0.0, %v163_v22 }
 0x129   : > { %v170_v21 = vadd.f32 %v169_v19, %v168_v20 }
 0x12b   : > { %v160_v23 = vpop.permute.xlu1 %159 }
 0x12c   : > { %v161_v24 = vsel %vm157_vm4, 0.0, %v160_v23 }
 0x12d   : > { %v165_v26 = vsub.f32 %v161_v24, %v164_v25 }
 0x12f   : > { %v172_v27 = vpop.permute.xlu1 %171  ;;  %v175_v30 = vmul.f32 %v165_v26, %v165_v26 }
 0x130   : > { %v173_v28 = vsel %vm158_vm5, 0.0, %v172_v27 }
 0x131   : > { %v174_v29 = vadd.f32 %v173_v28, %v170_v21 }
 0x133   : > { %v176_v31 = vmul.f32 %v174_v29, %v174_v29 }
 0x135   : > { %v177_v32 = vadd.f32 %v176_v31, %v175_v30 }
 0x137   : > { %332 = vrsqrt.f32 %v177_v32  ;;  %vm180_vm6 = vcmp.eq.f32.partialorder %v177_v32, inf  ;;  %v183_v35 = vand.u32 2147483648, %v177_v32  ;;  %vm182_vm7 = vcmp.eq.f32.partialorder %v177_v32, 0.0 }
 0x141   : > { %v333_v33 = vpop.eup %332 }
 0x142   : > { %v179_v34 = vmul.f32 %v333_v33, %v177_v32 }
 0x144   : > { %v181_v36 = vsel %vm180_vm6, %v177_v32, %v179_v34 }
 0x145   : > { %v184_v37 = vsel %vm182_vm7, %v183_v35, %v181_v36 }
 0x146   : > { %185 = vst [vmem:[%s131_s29] sm:$0xff] %v184_v37 }
 0x147   : > { %377 = shalt.err (!%p374_p4)
}
 0x148   : > { %s378_s16 = scalar_lea.hbm %s569_s4, 128  ;;  %s382_s22 = scalar_lea.hbm %s614_s1, 256 }
 0x149   : > { %p379_p5 = scmp.ne.s32.totalorder %s569_s4, %s378_s16  ;;  %p383_p0 = scmp.lt.u32.totalorder %s569_s4, %s614_s1 }
 0x14a   : > { %p384_p1 = scmp.lt.u32.totalorder %s382_s22, %s378_s16  ;;  %p386_p6 = scmp.lt.u32.totalorder %s378_s16, %s569_s4 }
 0x14b   : > { %p380_p8 = pnand %p379_p5, %p623_p11 }
 0x14c   : > { %p385_p3 = por %p384_p1, %p383_p0 }
 0x14d   : > { %p381_p9 = pneg %p380_p8 }
 0x14e   : > { %p387_p12 = por %p386_p6, %p385_p3 }
 0x150   : > { %p388_p13 = pnand %p387_p12, %p381_p9 }
 0x152   : > { %391 = shalt.err (!%p388_p13)
}
 0x153   : > { %284 = dma.vmem_to_hbm [thread:$0]  (%p623_p11), %s571_s30, 128, %s569_s4, %s187_s10  }
 0x154 PF: > { %s212_s25 = sand.u32 1, %s418_s6   ;;  %p624_p7 = scmp.ne.s32.totalorder %s619_s19, 0 }
 0x155   : > { %p625_p10 = scmp.ge.s32.totalorder %s430_s9, 2  ;;  %s213_s26 = scalar_lea.sflag [#allocation4], %s212_s25 }
 0x157   : > { %p291_p2 = pnand %p625_p10, %p624_p7 }
 0x159   : > { %413 = dma.done.wait (!%p291_p2), %s213_s26, 128  }
 0x15a   : > { %415 = vsyncadd (!%p291_p2), %s213_s26, 4294967168  ;;  %p14_p4 = scmp.ge.s32.totalorder %s473_s12, 4   ;;  %s626_s6 = smov %s422_s7 }
 0x15b   : > { %s627_s7 = smov %s426_s8  ;;  %s628_s8 = smov %s485_s15 }
 0x15c   : > { %s629_s9 = smov %s473_s12  ;;  %16 = sbr.rel (!%p14_p4) target bundleno = 5 (0x5), region = 69 }
 0x163   :  { %218 = vsyncpa [#allocation3], 1 }
 0x164   :  { %220 = vsyncpa [#allocation3 + $0x1], 1 }
 0x165   :  { %221 = vsyncpa [#allocation4], 1 }
 0x166   :  { %223 = vsyncpa [#allocation4 + $0x1], 1 }

</bundles_post_ra>
